<compile_context>
chip_gen: v6e
topology: v6e:2x2x1
jax: 0.10.0
libtpu: 0.0.40
codegen_flags: <defaults>
</compile_context>

<pallas_src>
import numpy as np
import jax
import jax.numpy as jnp
from jax.experimental import pallas as pl
from jax.experimental.pallas import tpu as pltpu


# ---------------------------------------------------------------------------
# Pass 1: streamed global spatial SUM  (B, C, HW) -> (B, C, 1)
# ---------------------------------------------------------------------------
def _make_pool_sum_kernel(hw, chunk, n_sub, ragged):
    """hw, chunk, n_sub, ragged are trace-time Python constants."""

    def kernel(x_ref,       # (C, chunk) current HW chunk of one batch element
               sum_ref,     # (C, 1)     spatial sum output (written at finalize)
               acc_ref):    # (C, 128)   f32 lane-wise partial-sum accumulator
        k = pl.program_id(1)

        @pl.when(k == 0)
        def _():
            acc_ref[...] = jnp.zeros_like(acc_ref)

        x = x_ref[...].astype(jnp.float32)

        if ragged:
            # Mask lanes beyond HW (last chunk overhangs the array; OOB block
            # reads are unspecified).  jnp.where (not multiply) so NaN/Inf
            # garbage in the OOB lanes cannot leak into the sum.
            lane = jax.lax.broadcasted_iota(jnp.int32, (1, chunk), 1)
            mask = (k * chunk + lane) < hw
            x = jnp.where(mask, x, 0.0)

        # Lane-wise partial sums: VPU adds over 128-lane slices; no per-step
        # cross-lane (XLU) reduction.
        partial = x[:, 0:128]
        for i in range(1, n_sub):
            partial = partial + x[:, i * 128:(i + 1) * 128]
        acc_ref[...] += partial

        @pl.when(k == pl.num_programs(1) - 1)
        def _():
            # Single cross-lane reduce at the end of the HW sweep.
            sum_ref[...] = jnp.sum(acc_ref[...], axis=1, keepdims=True)

    return kernel


# ---------------------------------------------------------------------------
# Pass 2: broadcast the pooled (O, 1) vector over HW (the 1x1 -> HxW upsample)
# ---------------------------------------------------------------------------
def _broadcast_kernel(vec_ref,    # (O, 1)       pooled result for this batch elem
                      out_ref):   # (O, chunk)   lane-dense output chunk
    out_ref[...] = jnp.broadcast_to(vec_ref[...], out_ref.shape).astype(out_ref.dtype)


# ---------------------------------------------------------------------------
# Chunk / VMEM sizing helpers
# ---------------------------------------------------------------------------
def _pick_chunk(rows, hw, itemsize, target_bytes=4 << 20, max_lanes=16384):
    """Largest lane-dense (multiple-of-128) chunk such that one (rows, chunk)
    block is ~target_bytes, clamped to HW rounded up to 128."""
    lanes = target_bytes // max(1, rows * itemsize)
    lanes = max(128, min(int(lanes), max_lanes))
    lanes = (lanes // 128) * 128
    hw_ceil = ((hw + 127) // 128) * 128
    return min(lanes, hw_ceil)


def _vmem_limit(needed_bytes):
    # Raise above v5e's 16 MiB default, stay well under v7x's 64 MiB physical.
    return int(min(48 << 20, max(32 << 20, 2 * needed_bytes)))


# ---------------------------------------------------------------------------
# Wrapper
# ---------------------------------------------------------------------------
def aspp_pooling(x, params, *, chunk_pool=None, chunk_bcast=None):
    """x: (B, C, H, W).  params: w (O, C), bn_scale (O, 1), bn_shift (O, 1).
    Returns (B, O, H, W)."""
    B, C, H, W = x.shape
    HW = H * W
    O = params["w"].shape[0]
    itemsize = x.dtype.itemsize

    if chunk_pool is None:
        chunk_pool = _pick_chunk(C, HW, itemsize)
    if chunk_bcast is None:
        chunk_bcast = _pick_chunk(O, HW, itemsize)

    n_chunks = pl.cdiv(HW, chunk_pool)
    n_sub = chunk_pool // 128
    ragged = (HW % chunk_pool) != 0

    x_flat = x.reshape(B, C, HW)            # free metadata reshape (contiguous)

    # ---- pass 1: streamed spatial sums -> (B, C, 1) -------------------------
    p1_bytes = 2 * C * chunk_pool * itemsize + 2 * C * 4 + C * 128 * 4
    sums = pl.pallas_call(
        _make_pool_sum_kernel(HW, chunk_pool, n_sub, ragged),
        out_shape=jax.ShapeDtypeStruct((B, C, 1), jnp.float32),
        grid=(B, n_chunks),
        in_specs=[pl.BlockSpec((None, C, chunk_pool), lambda b, k: (b, 0, k))],
        out_specs=pl.BlockSpec((None, C, 1), lambda b, k: (b, 0, 0)),
        scratch_shapes=[pltpu.VMEM((C, 128), jnp.float32)],
        compiler_params=pltpu.CompilerParams(
            dimension_semantics=("parallel", "arbitrary"),
            vmem_limit_bytes=_vmem_limit(p1_bytes)),
    )(x_flat)

    # ---- tiny 1x1 conv + folded BN + ReLU: one batched matmul in plain JAX --
    w = params["w"].astype(jnp.float32)                                  # (O, C)
    scale_eff = (params["bn_scale"][:, 0] / float(HW)).astype(jnp.float32)  # 1/HW folded
    shift = params["bn_shift"][:, 0].astype(jnp.float32)
    y = jnp.einsum("bc,oc->bo", sums[:, :, 0], w)                        # (B, O)
    pooled = jax.nn.relu(y * scale_eff[None, :] + shift[None, :]).astype(x.dtype)

    # ---- pass 2: broadcast (upsample 1x1 -> HxW), lane-dense stores ---------
    n_chunks_b = pl.cdiv(HW, chunk_bcast)
    p2_bytes = 2 * O * chunk_bcast * itemsize + 2 * O * itemsize
    out_flat = pl.pallas_call(
        _broadcast_kernel,
        out_shape=jax.ShapeDtypeStruct((B, O, HW), x.dtype),
        grid=(B, n_chunks_b),
        in_specs=[pl.BlockSpec((None, O, 1), lambda b, k: (b, 0, 0))],
        out_specs=pl.BlockSpec((None, O, chunk_bcast), lambda b, k: (b, 0, k)),
        compiler_params=pltpu.CompilerParams(
            dimension_semantics=("parallel", "parallel"),
            vmem_limit_bytes=_vmem_limit(p2_bytes)),
    )(pooled.reshape(B, O, 1))

    return out_flat.reshape(B, O, H, W)


# ---------------------------------------------------------------------------
# Pure-JAX reference + parameter construction (inference-mode BN folded)
# ---------------------------------------------------------------------------
def reference(x, params):
    B, C, H, W = x.shape
    pooled = jnp.mean(x, axis=(2, 3))                               # (B, C)
    y = jnp.einsum("oc,bc->bo", params["w"], pooled)                # (B, O)
    y = y * params["bn_scale"][None, :, 0] + params["bn_shift"][None, :, 0]
    y = jax.nn.relu(y)
    # F.interpolate of a 1x1 map to (H, W) replicates the single value
    return jnp.broadcast_to(y[:, :, None, None], (B, y.shape[1], H, W))


def make_params(key, in_dim, out_dim):
    kw, kb = jax.random.split(key, 2)
    eps = 1e-5

    def fold_bn(k, dim):
        kw_, kb_, km_, kv_ = jax.random.split(k, 4)
        w = jax.random.normal(kw_, (dim,)) * 0.1 + 1.0
        b = jax.random.normal(kb_, (dim,)) * 0.1
        mean = jax.random.normal(km_, (dim,)) * 0.05
        var = jnp.abs(jax.random.normal(kv_, (dim,))) * 0.1 + 0.9
        scale = w / jnp.sqrt(var + eps)
        shift = b - mean * scale
        return (scale.reshape(dim, 1).astype(jnp.float32),
                shift.reshape(dim, 1).astype(jnp.float32))

    bn_scale, bn_shift = fold_bn(kb, out_dim)
    return {
        "w": (jax.random.normal(kw, (out_dim, in_dim)) * 0.1).astype(jnp.float32),
        "bn_scale": bn_scale,
        "bn_shift": bn_shift,
    }


if __name__ == "__main__":
    B, in_dim, out_dim = 2, 32, 16
    H = W = 17   # HW = 289: not a multiple of 128 -> exercises in-kernel tail
                 # masking (pass 1) and Pallas' masked ragged output stores (pass 2)

    key = jax.random.PRNGKey(0)
    kx, kp = jax.random.split(key)
    x = jax.random.normal(kx, (B, in_dim, H, W), dtype=jnp.float32)
    params = make_params(kp, in_dim, out_dim)

    ref = reference(x, params)

    # default (VMEM-budget-derived) chunking
    out = jax.block_until_ready(aspp_pooling(x, params))
    np.testing.assert_allclose(np.asarray(out), np.asarray(ref), rtol=1e-4, atol=1e-5)

    # small forced chunks: exercises the multi-chunk accumulator + ragged tail
    out_small = jax.block_until_ready(
        aspp_pooling(x, params, chunk_pool=128, chunk_bcast=128))
    np.testing.assert_allclose(np.asarray(out_small), np.asarray(ref),
                               rtol=1e-4, atol=1e-5)

    print("KERNEL_OK")
</pallas_src>

<mosaic_0001>
module attributes {stable_mosaic.version = 11 : i64} {
  func.func @kernel(%arg0: i32, %arg1: i32, %arg2: memref<1x32x384xf32, #tpu.memory_space<vmem>>, %arg3: memref<1x32x1xf32, #tpu.memory_space<vmem>>, %arg4: memref<32x128xf32, #tpu.memory_space<vmem>>) attributes {dimension_semantics = [#tpu.dimension_semantics<parallel>, #tpu.dimension_semantics<arbitrary>], iteration_bounds = array<i64: 2, 1>, scalar_prefetch = 0 : i64, scratch_operands = 1 : i64, tpu.core_type = #tpu.core_type<tc>, window_params = [{transform_indices = @transform_0, window_bounds = array<i64: 1, 32, 384>}, {transform_indices = @transform_1, window_bounds = array<i64: 1, 32, 1>}]} {
    %c0_i32 = arith.constant 0 : i32
    %0 = arith.cmpi eq, %arg1, %c0_i32 : i32
    %1 = arith.extui %0 : i1 to i32
    %c0_i32_0 = arith.constant 0 : i32
    %2 = arith.cmpi ne, %1, %c0_i32_0 : i32
    scf.if %2 {
      %cst_9 = arith.constant 0.000000e+00 : f32
      %26 = vector.broadcast %cst_9 : f32 to vector<32x128xf32>
      %c0_10 = arith.constant 0 : index
      %c0_11 = arith.constant 0 : index
      %27 = vector.load %arg4[%c0_10, %c0_11] : memref<32x128xf32, #tpu.memory_space<vmem>>, vector<32x128xf32>
      tpu.vector_store %arg4[%c0_10, %c0_11], %26 {strides = array<i32>} : memref<32x128xf32, #tpu.memory_space<vmem>>, vector<32x128xf32>,
    } else {
    }
    %c0 = arith.constant 0 : index
    %c0_1 = arith.constant 0 : index
    %c0_2 = arith.constant 0 : index
    %3 = vector.load %arg2[%c0, %c0_1, %c0_2] : memref<1x32x384xf32, #tpu.memory_space<vmem>>, vector<1x32x384xf32>
    %4 = vector.shape_cast %3 : vector<1x32x384xf32> to vector<32x384xf32>
    %5 = tpu.iota {dimensions = array<i32: 1>} : vector<1x384xi32>
    %c384_i32 = arith.constant 384 : i32
    %6 = arith.muli %arg1, %c384_i32 : i32
    %7 = vector.broadcast %6 : i32 to vector<1x384xi32>
    %8 = arith.addi %7, %5 : vector<1x384xi32>
    %c289_i32 = arith.constant 289 : i32
    %9 = vector.broadcast %c289_i32 : i32 to vector<1x384xi32>
    %10 = arith.cmpi slt, %8, %9 : vector<1x384xi32>
    %cst = arith.constant 0.000000e+00 : f32
    %11 = vector.shape_cast %10 : vector<1x384xi1> to vector<1x384xi1>
    %12 = vector.broadcast %11 : vector<1x384xi1> to vector<32x384xi1>
    %13 = vector.broadcast %cst : f32 to vector<32x384xf32>
    %14 = arith.select %12, %4, %13 : vector<32x384xi1>, vector<32x384xf32>
    %15 = vector.extract_strided_slice %14 {offsets = [0, 0], sizes = [32, 128], strides = [1, 1]} : vector<32x384xf32> to vector<32x128xf32>
    %16 = vector.extract_strided_slice %14 {offsets = [0, 128], sizes = [32, 128], strides = [1, 1]} : vector<32x384xf32> to vector<32x128xf32>
    %17 = arith.addf %15, %16 : vector<32x128xf32>
    %18 = vector.extract_strided_slice %14 {offsets = [0, 256], sizes = [32, 128], strides = [1, 1]} : vector<32x384xf32> to vector<32x128xf32>
    %19 = arith.addf %17, %18 : vector<32x128xf32>
    %c0_3 = arith.constant 0 : index
    %c0_4 = arith.constant 0 : index
    %20 = vector.load %arg4[%c0_3, %c0_4] : memref<32x128xf32, #tpu.memory_space<vmem>>, vector<32x128xf32>
    %21 = arith.addf %20, %19 : vector<32x128xf32>
    %c0_5 = arith.constant 0 : index
    %c0_6 = arith.constant 0 : index
    %22 = vector.load %arg4[%c0_5, %c0_6] : memref<32x128xf32, #tpu.memory_space<vmem>>, vector<32x128xf32>
    tpu.vector_store %arg4[%c0_5, %c0_6], %21 {strides = array<i32>} : memref<32x128xf32, #tpu.memory_space<vmem>>, vector<32x128xf32>,
    %c0_i32_7 = arith.constant 0 : i32
    %23 = arith.cmpi eq, %arg1, %c0_i32_7 : i32
    %24 = arith.extui %23 : i1 to i32
    %c0_i32_8 = arith.constant 0 : i32
    %25 = arith.cmpi ne, %24, %c0_i32_8 : i32
    scf.if %25 {
      %c0_9 = arith.constant 0 : index
      %c0_10 = arith.constant 0 : index
      %26 = vector.load %arg4[%c0_9, %c0_10] : memref<32x128xf32, #tpu.memory_space<vmem>>, vector<32x128xf32>
      %cst_11 = arith.constant dense<0.000000e+00> : vector<32xf32>
      %27 = vector.multi_reduction <add>, %26, %cst_11 [1] : vector<32x128xf32> to vector<32xf32>
      %28 = vector.shape_cast %27 : vector<32xf32> to vector<32x1xf32>
      %c0_12 = arith.constant 0 : index
      %c0_13 = arith.constant 0 : index
      %c0_14 = arith.constant 0 : index
      %29 = vector.load %arg3[%c0_12, %c0_13, %c0_14] : memref<1x32x1xf32, #tpu.memory_space<vmem>>, vector<1x32x1xf32>
      %30 = vector.shape_cast %29 : vector<1x32x1xf32> to vector<32x1xf32>
      %31 = vector.shape_cast %28 : vector<32x1xf32> to vector<1x32x1xf32>
      tpu.vector_store %arg3[%c0_12, %c0_13, %c0_14], %31 {strides = array<i32>} : memref<1x32x1xf32, #tpu.memory_space<vmem>>, vector<1x32x1xf32>,
    } else {
    }
    return
  }
  func.func @transform_0(%arg0: i32, %arg1: i32) -> (i32, i32, i32) {
    %c0_i32 = arith.constant 0 : i32
    %c0_i32_0 = arith.constant 0 : i32
    return %arg0, %c0_i32, %arg1 : i32, i32, i32
  }
  func.func @transform_1(%arg0: i32, %arg1: i32) -> (i32, i32, i32) {
    %c0_i32 = arith.constant 0 : i32
    %c0_i32_0 = arith.constant 0 : i32
    %c0_i32_1 = arith.constant 0 : i32
    return %arg0, %c0_i32, %c0_i32_0 : i32, i32, i32
  }
}

</mosaic_0001>

<bundles_post_ra>
// kernel: tpu_custom_call.1
= control target key start
LH: loop header
LB: loop body
LE: loop exit
PB: predicated region body
PF: predicated region fallthrough
CT: control target
= control target key end

     0   :  { %6 = vsyncpa [#allocation4], 0  ;;  %s580_s0 = inlined_call_operand.hbm [shape: f32[2,32,289], index: 0, kind: input, shape index: {}]   ;;  %s581_s1 = inlined_call_operand.vmem [shape: f32[2,32,1], index: 1, kind: output, shape index: {}]  }
   0x1   :  { %8 = vsyncpa [#allocation4 + $0x1], 0  ;;  %s486_s6 = smov 0   ;;  %s488_s7 = smov 0  }
   0x2   :  { %s490_s8 = smov 0   ;;  %s492_s9 = smov 0  }
   0x3   :  { %s494_s10 = smov 0   ;;  %s496_s11 = smov 0  }
   0x4 LB: > { %s322_s12 = sadd.s32 4294967295, %s471_s11   ;;  %s26_s13 = sadd.s32 1, %s467_s10  ;;  %s471_s11 = sphi %s496_s11, %s14_s11   ;;  %s467_s10 = sphi %s494_s10, %s588_s10   ;;  %s463_s9 = sphi %s492_s9, %s587_s9   ;;  %s459_s8 = sphi %s490_s8, %s586_s8   ;;  %s455_s7 = sphi %s488_s7, %s585_s7   ;;  %s451_s6 = sphi %s486_s6, %s584_s6  }
   0x5   : > { %p28_p0 = scmp.ge.s32.totalorder %s26_s13, 2  ;;  %s35_s14 = sadd.s32 1, %s459_s8 }
   0x6   : > { %p42_p1 = scmp.ne.s32.totalorder %s459_s8, %s455_s7  ;;  %p43_p2 = scmp.eq.s32.totalorder %s471_s11, 0 }
   0x7   : > { %s590_s13 = smov (%p28_p0, %s26_s13), 0  ;;  %p48_p4 = scmp.ne.s32.totalorder %s455_s7, %s451_s6 }
   0x8   : > { %p44_p3 = por %p43_p2, %p42_p1  ;;  %s30_s15 = ssub.s32 %s467_s10, %s590_s13 }
   0x9   : > { %p49_p5 = scmp.eq.s32.totalorder %s322_s12, 0  ;;  %p33_p6 = scmp.eq.s32.totalorder %s30_s15, 0 }
   0xa   : > { %p342_p8 = scmp.lt.s32.totalorder %s471_s11, 2  ;;  %s98_s18 = sand.u32 1, %s459_s8  }
   0xb   : > { %p525_p7 = por %p49_p5, %p48_p4  ;;  %s334_s19 = smul.u32 1536, %s467_s10 }
   0xc   : > { %s531_s17 = scalar_select %p33_p6, %s459_s8, %s35_s14  }
   0xd   : > { %s333_s20 = smul.u32 96, %s98_s18  ;;  %s110_s23 = scalar_lea.hbm %s580_s0, %s334_s19 }
   0xe   : > { %p538_p9 = pnand %p342_p8, %p44_p3  ;;  %s99_s27 = scalar_lea.sflag [#allocation4], %s98_s18 }
   0xf   : > { %s102_s25 = scalar_lea.vmem [#allocation3], %s333_s20  ;;  %s473_s29 = smov [#allocation3]  }
  0x10   : > { %s111_s26 = sshll.u32 %s102_s25, 4  ;;  %p395_p10 = pneg %p538_p9  ;;  %s112_s26 = int_to_ptr.vmem [resolvable:$true] %s111_s26 }
  0x11   : > { %s406_s28 = scalar_lea.vmem %s112_s26, 1536  ;;  %s411_s30 = sshll.u32 %s473_s29, 4  ;;  %s412_s30 = int_to_ptr.vmem [resolvable:$false] %s411_s30 }
  0x12   : > { %p407_p11 = scmp.ne.s32.totalorder %s112_s26, %s406_s28  ;;  %s413_s2 = scalar_lea.vmem %s412_s30, 3072 }
  0x13   : > { %p414_p0 = scmp.lt.s32.totalorder %s112_s26, %s412_s30  ;;  %p415_p1 = scmp.lt.s32.totalorder %s413_s2, %s406_s28 }
  0x14   : > { %p409_p12 = pnand %p407_p11, %p395_p10 }
  0x15   : > { %p416_p2 = por %p415_p1, %p414_p0 }
  0x16   : > { %p410_p13 = pneg %p409_p12 }
  0x18   : > { %p417_p3 = pnand %p416_p2, %p410_p13 }
  0x1a   : > { %420 = shalt.err (!%p417_p3)
}
  0x1b   : > { %s474_s3 = smov 384   ;;  %s475_s4 = smov 24  }
  0x1c   : > { %341 = dma.hbm_to_vmem [thread:$0]  (!%p538_p9), %s110_s23, 1536, %s112_s26, %s99_s27, %s474_s3, %s474_s3, %s475_s4  }
  0x1d   : > { %p327_p4 = scmp.ge.s32.totalorder %s471_s11, 1  ;;  %p119_p5 = scmp.lt.s32.totalorder %s471_s11, 3 }
  0x1f   : > { %p120_p6 = pnand %p327_p4, %p119_p5 }
  0x20   : > { %s125_s5 = sand.u32 (!%p120_p6), 1, %s455_s7  }
  0x21   : > { %123 = sbr.rel (%p120_p6) target bundleno = 192 (0xc0), region = 24  ;;  %s126_s12 = scalar_lea.sflag (!%p120_p6), [#allocation4], %s125_s5 }
  0x22   : > { %s335_s6 = smul.u32 (!%p120_p6), 96, %s125_s5 }
  0x24   : > { %s129_s14 = scalar_lea.vmem (!%p120_p6), [#allocation3], %s335_s6 }
  0x26   : > { %446 = dma.done.wait (%p525_p7), %s126_s12, 1536  }
  0x27   : > { %448 = vsyncadd (%p525_p7), %s126_s12, 4294965760  ;;  %v174_v0 = vlaneseq  ;;  %v168_v3 = vld [vmem:[%s129_s14 + $0x30] sm:$0xff]  ;;  %v169_v4 = vld [vmem:[%s129_s14 + $0x38] sm:$0xff]  ;;  %p149_p7 = scmp.lt.s32.totalorder %s463_s9, 1  ;;  %vm239_vm1 = vcmask 7168  }
  0x28   : > { %v170_v5 = vld [vmem:[%s129_s14 + $0x40] sm:$0xff]  ;;  %v206_v7 = vadd.f32 %v169_v4, %v168_v3  ;;  %v163_v9 = vld [vmem:[%s129_s14 + $0x8] sm:$0xff]  ;;  %v164_v10 = vld [vmem:[%s129_s14 + $0x10] sm:$0xff] }
  0x29   : > { %v175_v1 = vand.u32 127, %v174_v0  ;;  %v162_v8 = vld [vmem:[%s129_s14] sm:$0xff]  ;;  %v171_v13 = vld [vmem:[%s129_s14 + $0x48] sm:$0xff]  ;;  %v172_v14 = vld [vmem:[%s129_s14 + $0x50] sm:$0xff]  ;;  %s592_s9 = smov (!%p149_p7, %s463_s9), 1 }
  0x2a   : > { %v204_v12 = vadd.f32 %v163_v9, %v162_v8  ;;  %v173_v15 = vld [vmem:[%s129_s14 + $0x58] sm:$0xff]  ;;  %v207_v18 = vadd.f32 %v172_v14, %v171_v13  ;;  %v166_v20 = vld [vmem:[%s129_s14 + $0x20] sm:$0xff]  ;;  %v167_v21 = vld [vmem:[%s129_s14 + $0x28] sm:$0xff]  ;;  %s332_s15 = sshll.u32 %s592_s9, 5 }
  0x2b   : > { %v177_v2 = vadd.s32 256, %v175_v1  ;;  %v165_v19 = vld [vmem:[%s129_s14 + $0x18] sm:$0xff]  ;;  %s153_s19 = scalar_lea.vmem %s581_s1, %s332_s15 }
  0x2c   : > { %v205_v24 = vadd.f32 %v166_v20, %v165_v19 }
  0x2d   : > { %vm185_vm0 = vcmp.lt.s32.totalorder %v177_v2, 289 }
  0x2e   : > { %v200_v6 = vsel %vm185_vm0, %v170_v5, 0.0  ;;  %v194_v11 = vsel %vm185_vm0, %v164_v10, 0.0  ;;  %v203_v17 = vsel %vm185_vm0, %v173_v15, 0.0  ;;  %v197_v23 = vsel %vm185_vm0, %v167_v21, 0.0 }
  0x2f   : > { %v210_v16 = vadd.f32 %v206_v7, %v200_v6  ;;  %v208_v22 = vadd.f32 %v204_v12, %v194_v11  ;;  %v211_v25 = vadd.f32 %v207_v18, %v203_v17  ;;  %v209_v26 = vadd.f32 %v205_v24, %v197_v23 }
  0x31   : > { %235 = vadd.xlane.f32.xlu1 %v210_v16  ;;  %231 = vadd.xlane.f32.xlu0 %v208_v22 }
  0x35   : > { %237 = vadd.xlane.f32.xlu1 %v211_v25  ;;  %233 = vadd.xlane.f32.xlu0 %v209_v26 }
  0xba   : > { %v236_v27 = vpop.xlane.xlu1 %235  ;;  %v232_v28 = vpop.xlane.xlu0 %231 }
  0xbb   : > { %242 = vst.msk [vmem:[%s153_s19 + $0x10] sm:$0xff] %vm239_vm1, %v236_v27  ;;  %240 = vst.msk [vmem:[%s153_s19] sm:$0xff] %vm239_vm1, %v232_v28 }
  0xbe   : > { %v238_v29 = vpop.xlane.xlu1 %237  ;;  %v234_v30 = vpop.xlane.xlu0 %233 }
  0xbf   : > { %243 = vst.msk [vmem:[%s153_s19 + $0x18] sm:$0xff] %vm239_vm1, %v238_v29  ;;  %241 = vst.msk [vmem:[%s153_s19 + $0x8] sm:$0xff] %vm239_vm1, %v234_v30 }
  0xc0 PF: > { %s14_s11 = sadd.s32 1, %s471_s11   ;;  %s584_s6 = smov %s455_s7 }
  0xc1   : > { %p11_p8 = scmp.ge.s32.totalorder %s14_s11, 4   ;;  %s585_s7 = smov %s459_s8 }
  0xc2   : > { %s586_s8 = smov %s531_s17  ;;  %s587_s9 = smov %s467_s10 }
  0xc3   : > { %s588_s10 = smov %s590_s13  ;;  %13 = sbr.rel (!%p11_p8) target bundleno = 4 (0x4), region = 72 }
  0xc8   :  { %265 = vsyncpa [#allocation4], 1 }
  0xc9   :  { %267 = vsyncpa [#allocation4 + $0x1], 1 }

</bundles_post_ra>
